<compile_context>
chip_gen: v6e
topology: v6e:2x2x1
jax: 0.10.0
libtpu: 0.0.40
codegen_flags: <defaults>
</compile_context>

<pallas_src>
import math

import jax
import jax.numpy as jnp
from jax.experimental import pallas as pl
from jax.experimental.pallas import tpu as pltpu


def _copy_kernel(x_ref, o_ref):
    # Identity copy of one (TB, TN) tile — the only "compute" a view entails.
    o_ref[...] = x_ref[...]


def _largest_divisor_tile(n: int, multiple: int, max_elems: int) -> int:
    """Largest divisor of n that is a multiple of `multiple` and <= max_elems.

    Falls back to the full extent n (exempt from the (8,128) rule) when n is
    not a multiple of `multiple` or no suitable divisor exists.
    """
    if n % multiple != 0:
        return n
    best = 0
    cand = multiple
    limit = min(n, max_elems)
    while cand <= limit:
        if n % cand == 0:
            best = cand
        cand += multiple
    return best if best > 0 else n


def reshape_forward(x: jax.Array, shape: tuple[int, ...]) -> jax.Array:
    """Equivalent of Reshape(shape).forward(x): x.view((x.shape[0],) + shape)."""
    batch = x.shape[0]
    n_in = math.prod(x.shape[1:])
    n_out = math.prod(shape)
    if n_in != n_out:
        raise ValueError(
            f"cannot view input of per-batch size {n_in} as shape {shape}"
        )

    # Flatten to (B, N) row-major — identical memory order to a contiguous
    # PyTorch tensor's .view().
    x2d = jnp.reshape(x, (batch, n_in))
    itemsize = jnp.dtype(x.dtype).itemsize

    # --- Tile selection -----------------------------------------------------
    # Lane (last) dim: multiple of 128, target up to 2048 lanes for lane-dense
    # unmasked vector stores and good HBM-roofline behavior.
    tn = _largest_divisor_tile(n_in, 128, 2048)
    # Sublane dim: multiple of 8, capped so one tile stays <= ~2 MiB (safe for
    # v5e's 16 MiB scoped VMEM and v7x's 64 MiB physical VMEM with
    # double-buffered input + aliased output tiles live).
    max_tile_bytes = 2 * 1024 * 1024
    max_tb = max(8, max_tile_bytes // max(1, tn * itemsize))
    tb = _largest_divisor_tile(batch, 8, max_tb)

    grid = (batch // tb, n_in // tn)

    out2d = pl.pallas_call(
        _copy_kernel,
        out_shape=jax.ShapeDtypeStruct((batch, n_in), x.dtype),
        grid=grid,
        in_specs=[pl.BlockSpec((tb, tn), lambda i, j: (i, j))],
        out_specs=pl.BlockSpec((tb, tn), lambda i, j: (i, j)),
        # Alias input buffer to output: no second HBM allocation / copy when
        # the input buffer is donatable (XLA inserts a copy otherwise).
        input_output_aliases={0: 0},
        compiler_params=pltpu.CompilerParams(
            dimension_semantics=("parallel", "parallel"),
        ),
        cost_estimate=pl.CostEstimate(
            flops=0,
            transcendentals=0,
            bytes_accessed=2 * batch * n_in * itemsize,
        ),
    )(x2d)

    # Final metadata reshape to (batch,) + shape (no data movement).
    return jnp.reshape(out2d, (batch,) + tuple(shape))


class Reshape:
    """Thin wrapper mirroring the PyTorch module (no parameters)."""

    def __init__(self, shape):
        self.shape = tuple(shape)

    def __call__(self, x):
        return reshape_forward(x, self.shape)


if __name__ == "__main__":
    key = jax.random.PRNGKey(0)
    # Small NCHW input: batch=2, channels=4, spatial=16x16.
    x = jax.random.normal(key, (2, 4, 16, 16), dtype=jnp.float32)

    # Reference computed first (plain reshape semantics == torch .view on
    # contiguous memory).
    ref = jnp.reshape(x, (x.shape[0], 16, 64))

    # Target shape (excluding batch): (16, 64) — 4*16*16 == 16*64 == 1024.
    mod = Reshape((16, 64))
    out = mod(x)
    out = jax.block_until_ready(out)

    assert out.shape == (2, 16, 64), out.shape
    assert out.dtype == x.dtype
    assert bool(jnp.array_equal(out, ref))

    print("KERNEL_OK")
</pallas_src>

<mosaic_0001>
module attributes {stable_mosaic.version = 11 : i64} {
  func.func @_copy_kernel(%arg0: i32, %arg1: i32, %arg2: memref<2x1024xf32, #tpu.memory_space<vmem>>, %arg3: memref<2x1024xf32, #tpu.memory_space<vmem>>) attributes {dimension_semantics = [#tpu.dimension_semantics<parallel>, #tpu.dimension_semantics<parallel>], iteration_bounds = array<i64: 1, 1>, scalar_prefetch = 0 : i64, scratch_operands = 0 : i64, tpu.core_type = #tpu.core_type<tc>, window_params = [{transform_indices = @transform_0, window_bounds = array<i64: 2, 1024>}, {transform_indices = @transform_1, window_bounds = array<i64: 2, 1024>}]} {
    %c0 = arith.constant 0 : index
    %c0_0 = arith.constant 0 : index
    %0 = vector.load %arg2[%c0, %c0_0] : memref<2x1024xf32, #tpu.memory_space<vmem>>, vector<2x1024xf32>
    %c0_1 = arith.constant 0 : index
    %c0_2 = arith.constant 0 : index
    %1 = vector.load %arg3[%c0_1, %c0_2] : memref<2x1024xf32, #tpu.memory_space<vmem>>, vector<2x1024xf32>
    tpu.vector_store %arg3[%c0_1, %c0_2], %0 {strides = array<i32>} : memref<2x1024xf32, #tpu.memory_space<vmem>>, vector<2x1024xf32>,
    return
  }
  func.func @transform_0(%arg0: i32, %arg1: i32) -> (i32, i32) {
    %c0_i32 = arith.constant 0 : i32
    return %arg0, %arg1 : i32, i32
  }
  func.func @transform_1(%arg0: i32, %arg1: i32) -> (i32, i32) {
    %c0_i32 = arith.constant 0 : i32
    return %arg0, %arg1 : i32, i32
  }
}

</mosaic_0001>

<bundles_post_ra>
// kernel: tpu_custom_call.1
= control target key start
LH: loop header
LB: loop body
LE: loop exit
PB: predicated region body
PF: predicated region fallthrough
CT: control target
= control target key end

     0   :  { %6 = vsyncpa [#allocation3], 0  ;;  %s104_s0 = inlined_call_operand.hbm [shape: f32[2,1024], index: 0, kind: input, shape index: {}, may-alias: {0,1}]   ;;  %s105_s1 = inlined_call_operand.hbm [shape: f32[2,1024], index: 1, kind: output, shape index: {}, may-alias: {0,1}]  }
   0x1   :  { %7 = vsyncpa [#allocation4], 0  ;;  %s86_s6 = smov [#allocation2]  }
   0x2   :  { %s14_s7 = sshll.u32 %s86_s6, 4  ;;  %s15_s7 = int_to_ptr.vmem [resolvable:$true] %s14_s7 }
   0x3   :  { %s50_s8 = scalar_lea.vmem %s15_s7, 256  ;;  %p55_p1 = scmp.lt.s32.totalorder %s15_s7, %s15_s7 }
   0x4   :  { %p51_p0 = scmp.ne.s32.totalorder %s15_s7, %s50_s8  ;;  %p56_p2 = scmp.lt.s32.totalorder %s50_s8, %s50_s8 }
   0x6   :  { %p57_p3 = por %p56_p2, %p55_p1 }
   0x8   :  { %p58_p4 = pnand %p57_p3, %p51_p0 }
   0xa   :  { %61 = shalt.err (!%p58_p4)
}
   0xb   :  { %17 = dma.hbm_to_vmem [thread:$0]  %s104_s0, 256, %s15_s7, [#allocation3]  }
   0xc   :  { %82 = dma.done.wait [#allocation3], 256  }
   0xd   :  { %83 = vsyncadd [#allocation3], 4294967040  ;;  %s87_s11 = smov [#allocation5]   ;;  %v21_v0 = vld [vmem:[#allocation2] sm:$0xff]  ;;  %v22_v1 = vld [vmem:[#allocation2 + $0x8] sm:$0xff] }
   0xe   :  { %s31_s12 = sshll.u32 %s87_s11, 4  ;;  %23 = vst [vmem:[#allocation5] sm:$0xff] %v21_v0  ;;  %24 = vst [vmem:[#allocation5 + $0x8] sm:$0xff] %v22_v1  ;;  %s32_s12 = int_to_ptr.vmem [resolvable:$true] %s31_s12 }
   0xf   :  { %s62_s13 = scalar_lea.vmem %s32_s12, 256  ;;  %p67_p6 = scmp.lt.s32.totalorder %s32_s12, %s32_s12 }
  0x10   :  { %p63_p5 = scmp.ne.s32.totalorder %s32_s12, %s62_s13  ;;  %p68_p7 = scmp.lt.s32.totalorder %s62_s13, %s62_s13 }
  0x12   :  { %p69_p8 = por %p68_p7, %p67_p6 }
  0x14   :  { %p70_p9 = pnand %p69_p8, %p63_p5 }
  0x16   :  { %73 = shalt.err (!%p70_p9)
}
  0x17   :  { %34 = dma.vmem_to_hbm [thread:$0]  %s32_s12, 256, %s105_s1, [#allocation4]  }
  0x18   :  { %84 = dma.done.wait [#allocation4], 256  }
  0x19   :  { %85 = vsyncadd [#allocation4], 4294967040 }
  0x1a   :  { %38 = vsyncpa [#allocation3], 1 }
  0x1b   :  { %39 = vsyncpa [#allocation4], 1 }

</bundles_post_ra>
